<compile_context>
chip_gen: v7x
topology: tpu7x:2x2x1
jax: 0.10.0
libtpu: 0.0.40
codegen_flags: <defaults>
</compile_context>

<pallas_src>
import jax
import jax.numpy as jnp
from jax import lax
from jax.experimental import pallas as pl
from jax.experimental.pallas import tpu as pltpu

# ----------------------------- model dims -----------------------------------
B, CIN, H, W = 2, 1, 16, 16        # input spectrogram (NCHW)
KH = KW = 3                        # conv kernel
C1 = 8                             # backbone conv channels == backbone feat dim
ADAPT_DIM = 32                     # head_config['input_dim'] (target_dim)
HID = 16                           # RegressionHead hidden dim
OUT = 1                            # angle prediction
HW = H * W
N = B * HW                         # 512 = lane-dense column count
K = CIN * KH * KW                  # 9 = im2col contraction dim

# ------------------------ packed-parameter slab layout ----------------------
# One [128, 32] f32 slab; every piece starts at a row multiple of 8, col 0.
# (32 lanes = widest piece, w1T [16, 32].)
SLAB_ROWS = 128
SLAB_COLS = 32
R_WC, R_BC = 0, 8          # wcT [8,9]   , bc  [8,1]
R_WA, R_BA = 16, 48        # waT [32,8]  , ba  [32,1]
R_W1, R_B1 = 80, 96        # w1T [16,32] , b1  [16,1]
R_W2, R_B2 = 112, 120      # w2T [1,16]  , b2  [1,1] (row)


# ----------------------------- Pallas kernel --------------------------------
def angle_model_kernel(patchesT_ref, w_ref, out_ref):
    # --- static slices into the packed weight slab (zero-cost views) -------
    wcT = w_ref[R_WC:R_WC + C1, 0:K]                 # [8, 9]
    bcc = w_ref[R_BC:R_BC + C1, 0:1]                 # [8, 1]
    waT = w_ref[R_WA:R_WA + ADAPT_DIM, 0:C1]         # [32, 8]
    bac = w_ref[R_BA:R_BA + ADAPT_DIM, 0:1]          # [32, 1]
    w1T = w_ref[R_W1:R_W1 + HID, 0:ADAPT_DIM]        # [16, 32]
    b1c = w_ref[R_B1:R_B1 + HID, 0:1]                # [16, 1]
    w2T = w_ref[R_W2:R_W2 + OUT, 0:HID]              # [1, 16]
    b2r = w_ref[R_B2:R_B2 + 1, 0:OUT]                # [1, 1] (row over OUT)

    # --- conv (im2col matmul), feature-major: [8,9] @ [9,512] -> [8,512] ---
    yT = jnp.dot(wcT, patchesT_ref[...],
                 preferred_element_type=jnp.float32) + bcc
    yT = jnp.maximum(yT, 0.0)                        # 4 lane-dense vregs

    # --- global average pool: per-batch lane reductions (XLU), no MXU pass --
    # Each batch owns a whole HW=256-lane segment (aligned to 128), so the
    # static slice + lane-sum is clean.  featT [8, B].
    inv_hw = jnp.float32(1.0 / HW)
    featT = jnp.concatenate(
        [jnp.sum(yT[:, b * HW:(b + 1) * HW], axis=-1, keepdims=True) * inv_hw
         for b in range(B)],
        axis=-1)                                      # [8, 2]

    # --- dim_adapter: Linear(8 -> 32) + ReLU (feature-major) ---------------
    aT = jnp.maximum(
        jnp.dot(waT, featT, preferred_element_type=jnp.float32) + bac, 0.0)  # [32,2]

    # --- RegressionHead: Linear -> ReLU -> Linear ---------------------------
    hT = jnp.maximum(
        jnp.dot(w1T, aT, preferred_element_type=jnp.float32) + b1c, 0.0)     # [16,2]

    # Final layer emits [B, OUT] directly: contract hT's feature axis (0)
    # with w2T's feature axis (1) -> no wrapper-side transpose needed.
    out = lax.dot_general(hT, w2T, (((0,), (1,)), ((), ())),
                          preferred_element_type=jnp.float32)                # [2,1]
    out_ref[...] = out + b2r


# ----------------------------- wrapper (jitted) ------------------------------
@jax.jit
def angle_estimation_forward(x_nchw, slab):
    """x_nchw: [B, CIN, H, W] float32, slab: [128,32] packed params -> [B, 1]."""
    # im2col (pad=1, stride=1), built directly in feature-major (transposed)
    # form: patchesT [K, B*HW] with k = cin*9 + dh*3 + dw, n = b*HW + h*W + w.
    # Pure index shuffling; allow_input_fusion lets XLA fuse it into operand 0
    # of the pallas_call instead of round-tripping an 18 KB buffer via HBM.
    xp = jnp.pad(x_nchw, ((0, 0), (0, 0), (1, 1), (1, 1)))
    cols = [xp[:, :, dh:dh + H, dw:dw + W]            # each [B, CIN, H, W]
            for dh in range(KH) for dw in range(KW)]
    pat = jnp.stack(cols, axis=0)                     # [9, B, CIN, H, W]
    pat = jnp.transpose(pat, (2, 0, 1, 3, 4))         # [CIN, 9, B, H, W]
    patchesT = pat.reshape(K, N).astype(jnp.float32)  # [9, 512]  lane-dense

    vmem = pl.BlockSpec(memory_space=pltpu.MemorySpace.VMEM)
    cost = pl.CostEstimate(
        flops=2 * (C1 * K * N + ADAPT_DIM * C1 * B
                   + HID * ADAPT_DIM * B + OUT * HID * B) + C1 * N,
        transcendentals=0,
        bytes_accessed=K * N * 4 + SLAB_ROWS * SLAB_COLS * 4 + B * OUT * 4,
    )
    # NOTE: grid-less single invocation on purpose — the kernel is launch/
    # latency bound (~90 KFLOP, ~34 KB traffic).  Do NOT grid over B=2 to
    # "use both v7x TensorCores"; per-step overhead would dominate.  If batch
    # grows by orders of magnitude, add grid=(B//tile,) with
    # dimension_semantics=("parallel",) keeping each tile aligned to whole
    # HW=256-column segments so the pool reduction never crosses a tile.
    out = pl.pallas_call(
        angle_model_kernel,
        out_shape=jax.ShapeDtypeStruct((B, OUT), jnp.float32),
        in_specs=[vmem, vmem],
        out_specs=vmem,
        cost_estimate=cost,
        compiler_params=pltpu.CompilerParams(
            allow_input_fusion=[True, False]),
    )(patchesT, slab)
    return out                                        # [B, OUT]


# ----------------------------- parameter init / packing ---------------------
def init_params(key):
    ks = jax.random.split(key, 4)
    # PyTorch Conv2d weight layout [Cout, Cin, kh, kw]; feature-major matmul
    # form is wcT = [Cout, Cin*kh*kw].
    conv_w = 0.1 * jax.random.normal(ks[0], (C1, CIN, KH, KW), jnp.float32)
    wcT = conv_w.reshape(C1, K)                                  # [8, 9]
    bc = 0.01 * jnp.arange(C1, dtype=jnp.float32)                # [8]
    wa = 0.1 * jax.random.normal(ks[1], (C1, ADAPT_DIM), jnp.float32)   # [8, 32]
    ba = jnp.zeros((ADAPT_DIM,), jnp.float32)
    w1 = 0.1 * jax.random.normal(ks[2], (ADAPT_DIM, HID), jnp.float32)  # [32, 16]
    b1 = 0.01 * jnp.ones((HID,), jnp.float32)
    w2 = 0.1 * jax.random.normal(ks[3], (HID, OUT), jnp.float32)        # [16, 1]
    b2 = jnp.zeros((OUT,), jnp.float32)
    return dict(wcT=wcT, bc=bc, wa=wa, ba=ba, w1=w1, b1=b1, w2=w2, b2=b2)


def pack_params(p):
    """Pack all weights/biases (transposed = feature-major) into one slab."""
    slab = jnp.zeros((SLAB_ROWS, SLAB_COLS), jnp.float32)

    def put(s, row, block):
        r, c = block.shape
        return s.at[row:row + r, 0:c].set(block)

    slab = put(slab, R_WC, p["wcT"])            # [8, 9]
    slab = put(slab, R_BC, p["bc"][:, None])    # [8, 1]
    slab = put(slab, R_WA, p["wa"].T)           # [32, 8]
    slab = put(slab, R_BA, p["ba"][:, None])    # [32, 1]
    slab = put(slab, R_W1, p["w1"].T)           # [16, 32]
    slab = put(slab, R_B1, p["b1"][:, None])    # [16, 1]
    slab = put(slab, R_W2, p["w2"].T)           # [1, 16]
    slab = put(slab, R_B2, p["b2"][None, :])    # [1, 1] (row over OUT)
    return slab


# ----------------------------- pure-JAX reference ---------------------------
def reference_forward(x_nchw, p):
    """Standard batch-major formulation (mirrors the PyTorch module)."""
    xp = jnp.pad(x_nchw, ((0, 0), (0, 0), (1, 1), (1, 1)))
    cols = [xp[:, :, dh:dh + H, dw:dw + W]
            for dh in range(KH) for dw in range(KW)]
    patches = jnp.stack(cols, axis=2)                          # [B, CIN, 9, H, W]
    patches = jnp.transpose(patches, (0, 3, 4, 1, 2)).reshape(N, K)
    y = jnp.maximum(patches @ p["wcT"].T + p["bc"][None, :], 0.0)   # [512, 8]
    feat = y.reshape(B, HW, C1).mean(axis=1)                        # [B, 8]
    a = jnp.maximum(feat @ p["wa"] + p["ba"][None, :], 0.0)         # [B, 32]
    h = jnp.maximum(a @ p["w1"] + p["b1"][None, :], 0.0)            # [B, 16]
    return h @ p["w2"] + p["b2"][None, :]                           # [B, 1]


if __name__ == "__main__":
    key = jax.random.PRNGKey(0)
    k_x, k_p = jax.random.split(key)
    x = jax.random.normal(k_x, (B, CIN, H, W), jnp.float32)   # NCHW, like PyTorch
    params = init_params(k_p)
    slab = pack_params(params)

    out = angle_estimation_forward(x, slab)
    out = jax.block_until_ready(out)

    ref = reference_forward(x, params)
    assert out.shape == (B, OUT), out.shape
    assert jnp.allclose(out, ref, atol=1e-4, rtol=1e-4), (out, ref)
    print("KERNEL_OK")
</pallas_src>

<mosaic_0001>
module attributes {stable_mosaic.version = 11 : i64} {
  func.func @angle_model_kernel(%arg0: memref<9x512xf32, #tpu.memory_space<vmem>>, %arg1: memref<128x32xf32, #tpu.memory_space<vmem>>, %arg2: memref<2x1xf32, #tpu.memory_space<vmem>>) attributes {dimension_semantics = [], scalar_prefetch = 0 : i64, scratch_operands = 0 : i64, tpu.core_type = #tpu.core_type<tc>} {
    %c0 = arith.constant 0 : index
    %c0_0 = arith.constant 0 : index
    %0 = vector.load %arg1[%c0, %c0_0] : memref<128x32xf32, #tpu.memory_space<vmem>>, vector<8x9xf32>
    %c8 = arith.constant 8 : index
    %c0_1 = arith.constant 0 : index
    %1 = vector.load %arg1[%c8, %c0_1] : memref<128x32xf32, #tpu.memory_space<vmem>>, vector<8x1xf32>
    %c16 = arith.constant 16 : index
    %c0_2 = arith.constant 0 : index
    %2 = vector.load %arg1[%c16, %c0_2] : memref<128x32xf32, #tpu.memory_space<vmem>>, vector<32x8xf32>
    %c48 = arith.constant 48 : index
    %c0_3 = arith.constant 0 : index
    %3 = vector.load %arg1[%c48, %c0_3] : memref<128x32xf32, #tpu.memory_space<vmem>>, vector<32x1xf32>
    %c80 = arith.constant 80 : index
    %c0_4 = arith.constant 0 : index
    %4 = vector.load %arg1[%c80, %c0_4] : memref<128x32xf32, #tpu.memory_space<vmem>>, vector<16x32xf32>
    %c96 = arith.constant 96 : index
    %c0_5 = arith.constant 0 : index
    %5 = vector.load %arg1[%c96, %c0_5] : memref<128x32xf32, #tpu.memory_space<vmem>>, vector<16x1xf32>
    %c112 = arith.constant 112 : index
    %c0_6 = arith.constant 0 : index
    %6 = vector.load %arg1[%c112, %c0_6] : memref<128x32xf32, #tpu.memory_space<vmem>>, vector<1x16xf32>
    %c120 = arith.constant 120 : index
    %c0_7 = arith.constant 0 : index
    %7 = vector.load %arg1[%c120, %c0_7] : memref<128x32xf32, #tpu.memory_space<vmem>>, vector<1x1xf32>
    %c0_8 = arith.constant 0 : index
    %c0_9 = arith.constant 0 : index
    %8 = vector.load %arg0[%c0_8, %c0_9] : memref<9x512xf32, #tpu.memory_space<vmem>>, vector<9x512xf32>
    %cst = arith.constant dense<0.000000e+00> : vector<8x512xf32>
    %9 = tpu.matmul %0, %8, %cst {dimension_numbers = #tpu.dot_dimension_numbers<[1], [0], [0], [1], [0, 0, 1, 1], [], []>} : vector<8x9xf32>, vector<9x512xf32>, vector<8x512xf32> -> vector<8x512xf32>
    %10 = vector.broadcast %1 : vector<8x1xf32> to vector<8x512xf32>
    %11 = arith.addf %9, %10 : vector<8x512xf32>
    %cst_10 = arith.constant 0.000000e+00 : f32
    %12 = vector.broadcast %cst_10 : f32 to vector<8x512xf32>
    %13 = arith.maximumf %11, %12 : vector<8x512xf32>
    %14 = vector.extract_strided_slice %13 {offsets = [0, 0], sizes = [8, 256], strides = [1, 1]} : vector<8x512xf32> to vector<8x256xf32>
    %cst_11 = arith.constant dense<0.000000e+00> : vector<8xf32>
    %15 = vector.multi_reduction <add>, %14, %cst_11 [1] : vector<8x256xf32> to vector<8xf32>
    %16 = vector.shape_cast %15 : vector<8xf32> to vector<8x1xf32>
    %cst_12 = arith.constant 3.906250e-03 : f32
    %17 = vector.broadcast %cst_12 : f32 to vector<8x1xf32>
    %18 = arith.mulf %16, %17 : vector<8x1xf32>
    %19 = vector.extract_strided_slice %13 {offsets = [0, 256], sizes = [8, 256], strides = [1, 1]} : vector<8x512xf32> to vector<8x256xf32>
    %cst_13 = arith.constant dense<0.000000e+00> : vector<8xf32>
    %20 = vector.multi_reduction <add>, %19, %cst_13 [1] : vector<8x256xf32> to vector<8xf32>
    %21 = vector.shape_cast %20 : vector<8xf32> to vector<8x1xf32>
    %cst_14 = arith.constant 3.906250e-03 : f32
    %22 = vector.broadcast %cst_14 : f32 to vector<8x1xf32>
    %23 = arith.mulf %21, %22 : vector<8x1xf32>
    %24 = tpu.concatenate %18, %23 in 1 : vector<8x1xf32>, vector<8x1xf32> -> vector<8x2xf32>
    %cst_15 = arith.constant dense<0.000000e+00> : vector<32x2xf32>
    %25 = tpu.matmul %2, %24, %cst_15 {dimension_numbers = #tpu.dot_dimension_numbers<[1], [0], [0], [1], [0, 0, 1, 1], [], []>} : vector<32x8xf32>, vector<8x2xf32>, vector<32x2xf32> -> vector<32x2xf32>
    %26 = vector.broadcast %3 : vector<32x1xf32> to vector<32x2xf32>
    %27 = arith.addf %25, %26 : vector<32x2xf32>
    %cst_16 = arith.constant 0.000000e+00 : f32
    %28 = vector.broadcast %cst_16 : f32 to vector<32x2xf32>
    %29 = arith.maximumf %27, %28 : vector<32x2xf32>
    %cst_17 = arith.constant dense<0.000000e+00> : vector<16x2xf32>
    %30 = tpu.matmul %4, %29, %cst_17 {dimension_numbers = #tpu.dot_dimension_numbers<[1], [0], [0], [1], [0, 0, 1, 1], [], []>} : vector<16x32xf32>, vector<32x2xf32>, vector<16x2xf32> -> vector<16x2xf32>
    %31 = vector.broadcast %5 : vector<16x1xf32> to vector<16x2xf32>
    %32 = arith.addf %30, %31 : vector<16x2xf32>
    %cst_18 = arith.constant 0.000000e+00 : f32
    %33 = vector.broadcast %cst_18 : f32 to vector<16x2xf32>
    %34 = arith.maximumf %32, %33 : vector<16x2xf32>
    %cst_19 = arith.constant dense<0.000000e+00> : vector<2x1xf32>
    %35 = tpu.matmul %34, %6, %cst_19 {dimension_numbers = #tpu.dot_dimension_numbers<[0], [1], [1], [0], [0, 1, 1, 0], [], []>} : vector<16x2xf32>, vector<1x16xf32>, vector<2x1xf32> -> vector<2x1xf32>
    %36 = vector.broadcast %7 : vector<1x1xf32> to vector<2x1xf32>
    %37 = arith.addf %35, %36 : vector<2x1xf32>
    %c0_20 = arith.constant 0 : index
    %c0_21 = arith.constant 0 : index
    %38 = vector.load %arg2[%c0_20, %c0_21] : memref<2x1xf32, #tpu.memory_space<vmem>>, vector<2x1xf32>
    tpu.vector_store %arg2[%c0_20, %c0_21], %37 {strides = array<i32>} : memref<2x1xf32, #tpu.memory_space<vmem>>, vector<2x1xf32>,
    return
  }
}

</mosaic_0001>

<bundles_post_ra>
// kernel: angle_estimation_forward.1
= control target key start
LH: loop header
LB: loop body
LE: loop exit
PB: predicated region body
PF: predicated region fallthrough
CT: control target
= control target key end

     0   :  { %vm44_vm0 = vcmask 1040384   ;;  %vm626_vm1 = vmmov 1   ;;  %v627_v3 = vmov 0.0   ;;  %v628_v8 = vmov 0   ;;  %s742_s0 = inlined_call_operand.vmem [shape: f32[9,512], index: 0, kind: input, shape index: {}]   ;;  %s743_s1 = inlined_call_operand.vmem [shape: f32[128,32], index: 1, kind: input, shape index: {}]   ;;  %s744_s2 = inlined_call_operand.vmem [shape: f32[2,1], index: 2, kind: output, shape index: {}]  }
   0x1   :  { %v28_v0 = vld [vmem:[%s742_s0 + $0x8] sm:$0xff]  ;;  %vm651_vm2 = vmpackc.low %vm44_vm0, %vm626_vm1  ;;  %121 = vmatprep.mubr.f32.mxu0 %v627_v3  ;;  %192 = vmatprep.mubr.f32.mxu1 %v627_v3  ;;  %v30_v5 = vld [vmem:[%s742_s0 + $0x18] sm:$0xff]  ;;  %vm40_vm3 = vcmask 72704   ;;  %vm233_vm4 = vcmask 64512   ;;  %vm211_vm5 = vcmask 7168   ;;  %vm345_vm6 = vcmask 261120  }
   0x2   :  { %v32_v1 = vld [vmem:[%s742_s0 + $0x28] sm:$0x1]  ;;  %v34_v6 = vld [vmem:[%s742_s0 + $0x38] sm:$0x1]  ;;  %v27_v7 = vld [vmem:[%s742_s0] sm:$0xff]  ;;  %624 = vset.pattern.permute.xlu0 %v628_v8  ;;  %625 = vset.pattern.permute.xlu1 %v628_v8  ;;  %vm465_vm7 = vcmask 130048  }
   0x3   :  { %v600_v4 = vpack.c.bf16 %v32_v1, %v28_v0  ;;  %v606_v9 = vpack.c.bf16 %v34_v6, %v30_v5  ;;  %v31_v10 = vld [vmem:[%s742_s0 + $0x20] sm:$0x1]  ;;  %v29_v11 = vld [vmem:[%s742_s0 + $0x10] sm:$0xff]  ;;  %v12_v15 = vld [vmem:[%s743_s1 + $0x8] sm:$0xff]  ;;  %vm629_vm8 = vmmov 0   ;;  %vm542_vm9 = vcmask 1024  }
   0x4   :  { %v33_v12 = vld [vmem:[%s742_s0 + $0x30] sm:$0x1]  ;;  %v603_v13 = vpack.c.bf16 %v31_v10, %v27_v7  ;;  %37 = vperm.xlu0 %624, %v12_v15   ;;  %v11_v16 = vld [vmem:[%s743_s1] sm:$0xff]  ;;  %v24_v33 = vld [vmem:[%s743_s1 + $0x68] sm:$0xff] }
   0x5   :  { %602 = vmatprep.subr.msk.bf16.mxu0 %vm651_vm2, %v600_v4  ;;  %v609_v14 = vpack.c.bf16 %v33_v12, %v29_v11  ;;  %608 = vmatprep.subr.msk.bf16.mxu1 %vm651_vm2, %v606_v9  ;;  %v13_v32 = vld [vmem:[%s743_s1 + $0x10] sm:$0xff]  ;;  %v18_v35 = vld [vmem:[%s743_s1 + $0x38] sm:$0xff]  ;;  %v19_v36 = vld [vmem:[%s743_s1 + $0x40] sm:$0xff] }
   0x6   :  { %605 = vmatpush1.bf16.msk.msra.mxu0 %vm651_vm2, %v603_v13  ;;  %v17_v34 = vld [vmem:[%s743_s1 + $0x30] sm:$0xff]  ;;  %v20_v37 = vld [vmem:[%s743_s1 + $0x48] sm:$0xff]  ;;  %v23_v38 = vld [vmem:[%s743_s1 + $0x60] sm:$0xff] }
   0x7   :  { %611 = vmatpush1.bf16.msk.msra.mxu1 %vm651_vm2, %v609_v14  ;;  %v14_v44 = vld [vmem:[%s743_s1 + $0x18] sm:$0xff]  ;;  %v15_v45 = vld [vmem:[%s743_s1 + $0x20] sm:$0xff]  ;;  %v16_v46 = vld [vmem:[%s743_s1 + $0x28] sm:$0xff] }
   0x8   :  { %v21_v47 = vld [vmem:[%s743_s1 + $0x50] sm:$0xff]  ;;  %v22_v2 = vld [vmem:[%s743_s1 + $0x58] sm:$0xff] }
   0x9   :  { %550 = vmatmul.mubr.msk.f32.vlgmr.msra.gmra.mrb[0].mxu0 %vm40_vm3, %v11_v16  ;;  %v25_v4 = vld [vmem:[%s743_s1 + $0x70] sm:$0x1]  ;;  %v560_v14 = vld [vmem:[%s743_s1 + $0x78] ss:$0 sm:$0xff] }
   0xa   :  { %553 = vmatmul.mubr.msk.f32.vlgmr.msra.gmra.mrb[0].mxu1 %vm40_vm3, %v11_v16  ;;  %578 = vmatprep.mubr.msk.f32.mxu0 %vm233_vm4, %v13_v32 }
   0xb   :  { %592 = vmatprep.mubr.msk.f32.mxu1 %vm345_vm6, %v21_v47 }
  0x83   :  { %v38_v17 = vpop.permute.xlu0 %37 }
  0xdc   :  { %v123_v18 = vpop.f32.mrb[0].mxu0 }
  0xdd   :  { %v194_v19 = vpop.f32.mrb[0].mxu1  ;;  %v124_v20 = vadd.f32 %v123_v18, %v38_v17  ;;  %v125_v22 = vpop.f32.mrb[1].mxu0 }
  0xde   :  { %v195_v21 = vadd.f32 %v194_v19, %v38_v17  ;;  %v196_v23 = vpop.f32.mrb[1].mxu1  ;;  %v126_v24 = vadd.f32 %v125_v22, %v38_v17 }
  0xdf   :  { %v197_v25 = vadd.f32 %v196_v23, %v38_v17  ;;  %v199_v26 = vmax.f32 %v124_v20, 0.0 }
  0xe0   :  { %v201_v27 = vmax.f32 %v195_v21, 0.0  ;;  %v200_v28 = vmax.f32 %v126_v24, 0.0 }
  0xe1   :  { %v202_v29 = vmax.f32 %v197_v25, 0.0 }
  0xe2   :  { %v203_v31 = vadd.f32 %v200_v28, %v199_v26 }
  0xe3   :  { %v207_v30 = vadd.f32 %v202_v29, %v201_v27 }
  0xe4   :  { %204 = vadd.xlane.f32.xlu0 %v203_v31 }
  0xe5   :  { %208 = vadd.xlane.f32.xlu1 %v207_v30 }
  0xf6   :  { %215 = vperm.xlu1 %625, %v17_v34  }
  0xfa   :  { %342 = vperm.xlu0 %624, %v24_v33   ;;  %220 = vperm.xlu1 %625, %v18_v35  }
  0xfe   :  { %225 = vperm.xlu1 %625, %v19_v36  }
 0x102   :  { %230 = vperm.xlu1 %625, %v20_v37  }
 0x106   :  { %337 = vperm.xlu1 %625, %v23_v38  }
 0x171   :  { %v205_v40 = vpop.xlane.xlu0 %204 }
 0x172   :  { %v209_v39 = vpop.xlane.xlu1 %208  ;;  %v206_v42 = vmul.f32 0.00390625, %v205_v40 }
 0x173   :  { %v210_v41 = vmul.f32 0.00390625, %v209_v39 }
 0x175   :  { %v212_v43 = vsel %vm211_vm5, %v206_v42, %v210_v41 }
 0x176   :  { %576 = vmatprep.subr.mxu0 %v212_v43  ;;  %v216_v48 = vpop.permute.xlu1 %215 }
 0x177   :  { %577 = vmatpush3.msra.mxu0 %v212_v43 }
 0x178   :  { %579 = vmatmul.mubr.msk.f32.vlgmr.msra.gmra.mrb[2].mxu0 %vm233_vm4, %v14_v44  ;;  %595 = vmatprep.subr.mxu0 %v627_v3 }
 0x179   :  { %581 = vmatprep.mubr.msk.f32.mxu0 %vm233_vm4, %v15_v45  ;;  %v343_v9 = vpop.permute.xlu0 %342 }
 0x17a   :  { %v221_v49 = vpop.permute.xlu1 %220 }
 0x17c   :  { %582 = vmatmul.mubr.msk.f32.gmra.mrb[4].mxu0 %vm233_vm4, %v16_v46 }
 0x17d   :  { %597 = vmatprep.mubr.msk.f32.mxu0 %vm629_vm8, %v627_v3 }
 0x17e   :  { %v226_v50 = vpop.permute.xlu1 %225  ;;  %596 = vmatpush3.xpose.msk.msra.mxu0 %vm465_vm7, %v25_v4 }
 0x182   :  { %v231_v56 = vpop.permute.xlu1 %230 }
 0x186   :  { %v338_v6 = vpop.permute.xlu1 %337 }
 0x24b   :  { %v580_v51 = vpop.f32.mrb[2].mxu0 }
 0x24c   :  { %v318_v52 = vadd.f32 %v580_v51, %v221_v49  ;;  %v312_v53 = vpop.f32.mrb[3].mxu0 }
 0x24d   :  { %v313_v54 = vadd.f32 %v312_v53, %v216_v48 }
 0x24e   :  { %v332_v55 = vmax.f32 %v318_v52, 0.0 }
 0x24f   :  { %v331_v57 = vmax.f32 %v313_v54, 0.0  ;;  %v583_v58 = vpop.f32.mrb[4].mxu0 }
 0x250   :  { %v328_v59 = vadd.f32 %v583_v58, %v231_v56  ;;  %v322_v60 = vpop.f32.mrb[5].mxu0 }
 0x251   :  { %v612_v61 = vpack.c.bf16 %v332_v55, %v331_v57  ;;  %v323_v62 = vadd.f32 %v322_v60, %v226_v50 }
 0x252   :  { %v334_v63 = vmax.f32 %v328_v59, 0.0 }
 0x253   :  { %v333_v0 = vmax.f32 %v323_v62, 0.0  ;;  %613 = vmatprep.subr.bf16.mxu1 %v612_v61 }
 0x254   :  { %615 = vmatpush3.bf16.msra.mxu1 %v612_v61 }
 0x255   :  { %v616_v1 = vpack.c.bf16 %v334_v63, %v333_v0 }
 0x257   :  { %617 = vmatprep.subr.bf16.mxu1 %v616_v1 }
 0x258   :  { %619 = vmatpush3.bf16.msra.mxu1 %v616_v1 }
 0x25b   :  { %593 = vmatmul.mubr.msk.f32.vlgmr.msra.gmra.mrb[2].mxu1 %vm345_vm6, %v22_v2 }
 0x32e   :  { %v594_v5 = vpop.f32.mrb[2].mxu1 }
 0x32f   :  { %v418_v7 = vpop.f32.mrb[3].mxu1  ;;  %v424_v10 = vadd.f32 %v594_v5, %v343_v9 }
 0x330   :  { %v419_v8 = vadd.f32 %v418_v7, %v338_v6 }
 0x331   :  { %v428_v12 = vmax.f32 %v424_v10, 0.0 }
 0x332   :  { %v427_v11 = vmax.f32 %v419_v8, 0.0 }
 0x334   :  { %433 = vxpose.xlu1.b32.start [1/2] (short) (narrow) %v427_v11, 8 }
 0x338   :  { %434 = vxpose.xlu1.b32.end [2/2] (short) (narrow) %v428_v12, 8 }
 0x3b4   :  { %v449_v13 = vpop.trf.xlu1 }
 0x3b5   :  { %598 = vmatmul.mubr.msk.f32.vlgmr.msra.gmra.mrb[6].mxu0 %vm465_vm7, %v449_v13 }
 0x488   :  { %v538_v15 = vpop.f32.mrb[6].mxu0 }
 0x489   :  { %v539_v16 = vadd.f32 %v560_v14, %v538_v15  ;;  %v599_v3 = vpop.f32.mrb[7].mxu0 }
 0x48b   :  { %543 = vst.msk [vmem:[%s744_s2] sm:$0x3] %vm542_vm9, %v539_v16 }

</bundles_post_ra>
